<compile_context>
chip_gen: v7x
topology: tpu7x:2x2x1
jax: 0.10.0
libtpu: 0.0.40
codegen_flags: <defaults>
</compile_context>

<pallas_src>
import jax
import jax.numpy as jnp
from jax.experimental import pallas as pl
from jax.experimental.pallas import tpu as pltpu


def _round_up(a, b):
    return (a + b - 1) // b * b


def _maybe_buffered_spec(block_shape, index_map, buffer_count):
    """BlockSpec with deeper pipelining when the installed Pallas supports it."""
    if buffer_count is not None and hasattr(pl, "Buffered"):
        try:
            return pl.BlockSpec(block_shape, index_map,
                                pipeline_mode=pl.Buffered(buffer_count))
        except TypeError:   # pipeline_mode kwarg not available in this version
            pass
    return pl.BlockSpec(block_shape, index_map)


def _weighted_row_sum(h, w_row):
    """Row-wise sum_j h[:, j] * w_row[0, j] -> (rows,) f32.

    Reduced 128 lanes at a time so the full (rows, cols) f32 product temporary
    is never materialized (keeps vreg/VMEM pressure flat at large row tiles).
    cols is always a multiple of 128 here, so the chunking is exact.
    """
    cols = h.shape[1]
    w_row = w_row.astype(jnp.float32)
    acc = None
    for c0 in range(0, cols, 128):
        part = jnp.sum(h[:, c0:c0 + 128] * w_row[:, c0:c0 + 128], axis=-1)
        acc = part if acc is None else acc + part
    return acc


# ----------------------------- kernels --------------------------------------


def _disc_resident_kernel(x_ref, w1_ref, b1_ref, w2_ref, b2_ref, o_ref):
    # x_ref : (TM, Dp)   w1_ref: (Dp, Dp)   b1_ref: (1, Dp)
    # w2_ref: (1, Dp)    b2_ref: (1, 1) in SMEM     o_ref: (1, 1, TM)
    h = jnp.dot(x_ref[...], w1_ref[...],
                preferred_element_type=jnp.float32) + b1_ref[...]
    h = jnp.maximum(h, 0.0)
    # Layer 2 (output width 1): VPU multiply + XLU reduce; an MXU matmul with a
    # single output column would waste >99% of the unit.
    out = _weighted_row_sum(h, w2_ref[...]) + b2_ref[0, 0]
    # Lane-dense store: one (1, 1, TM) row per grid step (unmasked vst).
    o_ref[...] = out.astype(o_ref.dtype)[None, None, :]


def _disc_hidden_tiled_kernel(x_ref, w1_ref, b1_ref, w2_ref, b2_ref, o_ref,
                              acc_ref):
    # Large-dim variant: grid = (row_tiles, hidden_tiles); the hidden axis is a
    # reduction ("arbitrary", last) and the layer-2 partial sums accumulate in
    # a small f32 VMEM scratch (init on first step, finalize on last).
    # x_ref : (TM, Dp)   w1_ref: (Dp, TN)   b1_ref/w2_ref: (1, TN)
    # b2_ref: (1, 1) SMEM   o_ref: (1, 1, TM)   acc_ref: (1, TM) f32
    n = pl.program_id(1)

    @pl.when(n == 0)
    def _():
        acc_ref[...] = jnp.zeros_like(acc_ref)

    h = jnp.dot(x_ref[...], w1_ref[...],
                preferred_element_type=jnp.float32) + b1_ref[...]
    h = jnp.maximum(h, 0.0)
    acc_ref[...] += _weighted_row_sum(h, w2_ref[...])[None, :]

    @pl.when(n == pl.num_programs(1) - 1)
    def _():
        o_ref[...] = (acc_ref[...] + b2_ref[0, 0]).astype(o_ref.dtype)[None]


# ----------------------------- wrappers --------------------------------------


def prepare_params(w1, b1, w2, b2, dtype=None):
    """Pad the Linear weights to 128-lane multiples ONCE, outside the hot path.

    Zero padding is exact: padded hidden columns give ReLU(0 + 0) = 0 and the
    matching w2 entries are 0.  Pass dtype=jnp.bfloat16 to halve HBM traffic /
    VMEM on v6e/v7x (the kernels keep f32 MXU accumulation).
    """
    dim = w1.shape[0]
    dpad = _round_up(dim, 128)
    if dtype is None:
        dtype = w1.dtype
    w1p = jnp.asarray(w1).astype(dtype)
    b1p = jnp.asarray(b1).reshape(1, dim).astype(dtype)
    w2p = jnp.asarray(w2).reshape(1, dim).astype(dtype)
    if dpad != dim:
        pad = dpad - dim
        w1p = jnp.pad(w1p, ((0, pad), (0, pad)))
        b1p = jnp.pad(b1p, ((0, 0), (0, pad)))
        w2p = jnp.pad(w2p, ((0, 0), (0, pad)))
    b2p = jnp.asarray(b2).reshape(1, 1).astype(jnp.float32)
    return w1p, b1p, w2p, b2p


def discriminator_forward(x, padded_params, *, tm=None, tn=None,
                          force_hidden_tiling=False):
    """x: (n_batch, max_len, dim) -> (n_batch, max_len, 1).

    `padded_params` comes from prepare_params() (pre-padded once, outside the
    per-call hot path).
    """
    w1p, b1p, w2p, b2p = padded_params
    n_batch, max_len, dim = x.shape
    m = n_batch * max_len
    out_dtype = x.dtype
    cdtype = w1p.dtype
    itemsize = jnp.dtype(cdtype).itemsize
    o_itemsize = jnp.dtype(out_dtype).itemsize
    dpad = w1p.shape[1]
    assert w1p.shape == (dpad, dpad) and dpad == _round_up(dim, 128)

    # ---- x: free reshape; lane-pad only when dim is not 128-aligned; rows are
    #      never padded (ragged last row tile; padded output rows stripped). ---
    x2d = x.reshape(m, dim)
    if dpad != dim:
        x2d = jnp.pad(x2d, ((0, 0), (0, dpad - dim)))
    if x2d.dtype != cdtype:
        x2d = x2d.astype(cdtype)

    # ---- VMEM budget: generation aware (v5e/v6e 128 MiB, v7x 64 MiB). -------
    try:
        vmem_cap = int(pltpu.get_tpu_info().vmem_capacity_bytes)
    except Exception:
        vmem_cap = 64 << 20          # most conservative physical size (v7x TC)
    budget = min((vmem_cap * 3) // 4, 96 << 20)       # target kernel footprint
    vmem_limit = int(min(vmem_cap - (4 << 20), budget + (16 << 20)))

    # Footprint model (bytes):
    #   static : w1 double-buffered + b1/w2 (constant index maps keep them hot)
    #   per row: x tile buffers + f32 hidden row + reduce temporaries + slack
    bx_sizing = 3 if dpad <= 256 else 2
    w_bytes = 2 * dpad * dpad * itemsize + 4 * dpad * itemsize
    per_row = bx_sizing * dpad * itemsize + dpad * 4 + 1024

    cost = pl.CostEstimate(
        flops=2 * m * dpad * dpad + 3 * m * dpad,
        transcendentals=0,
        bytes_accessed=itemsize * (m * dpad + dpad * dpad + 2 * dpad)
        + o_itemsize * m + 4,
    )

    use_resident_w1 = ((not force_hidden_tiling)
                       and (w_bytes + 128 * per_row <= budget))

    if use_resident_w1:
        # -------- Path A: w1 VMEM-resident, 1-D "parallel" row grid ----------
        if tm is None:
            tm_fit = max(128, ((budget - w_bytes) // per_row) // 128 * 128)
            tm = min(2048, tm_fit)        # diminishing returns past ~2k rows
        if m >= 256:
            # keep >= 2 row tiles so the parallel axis shards v7x's 2 TCs
            tm = min(tm, _round_up(pl.cdiv(m, 2), 128))
        else:
            tm = min(tm, _round_up(m, 8))
        num_tiles = pl.cdiv(m, tm)
        # deeper x pipelining when per-tile MXU work is short (small dpad)
        x_buffers = 3 if (dpad <= 256 and num_tiles >= 3) else None

        out3d = pl.pallas_call(
            _disc_resident_kernel,
            out_shape=jax.ShapeDtypeStruct((num_tiles, 1, tm), out_dtype),
            grid=(num_tiles,),
            in_specs=[
                _maybe_buffered_spec((tm, dpad), lambda i: (i, 0), x_buffers),
                pl.BlockSpec((dpad, dpad), lambda i: (0, 0)),       # w1 resident
                pl.BlockSpec((1, dpad), lambda i: (0, 0)),          # b1 resident
                pl.BlockSpec((1, dpad), lambda i: (0, 0)),          # w2 row
                pl.BlockSpec(memory_space=pltpu.MemorySpace.SMEM),  # b2 scalar
            ],
            out_specs=pl.BlockSpec((1, 1, tm), lambda i: (i, 0, 0)),
            compiler_params=pltpu.CompilerParams(
                dimension_semantics=("parallel",),
                vmem_limit_bytes=vmem_limit,
            ),
            cost_estimate=cost,
        )(x2d, w1p, b1p, w2p, b2p)
    else:
        # -------- Path B: hidden dim tiled (large dim), f32 accumulator ------
        if tm is None:
            tm = 256
        if m >= 256:
            tm = min(tm, _round_up(pl.cdiv(m, 2), 128))
        else:
            tm = min(tm, _round_up(m, 8))
        num_tiles = pl.cdiv(m, tm)

        if tn is None:
            avail = budget - 2 * tm * dpad * itemsize - (1 << 20)
            denom = 2 * dpad * itemsize + tm * 4
            tn = max(128, (max(avail, 0) // denom) // 128 * 128)
            tn = min(tn, dpad)
            while dpad % tn:              # hidden tiling must be exact
                tn -= 128
        assert tn % 128 == 0 and dpad % tn == 0
        n_tiles = dpad // tn
        # TODO(synk): for extreme dim (f32 dim >~ 40k) the contraction (K) dim
        # of layer 1 would also need tiling; not implemented here.

        out3d = pl.pallas_call(
            _disc_hidden_tiled_kernel,
            out_shape=jax.ShapeDtypeStruct((num_tiles, 1, tm), out_dtype),
            grid=(num_tiles, n_tiles),
            in_specs=[
                pl.BlockSpec((tm, dpad), lambda i, n: (i, 0)),   # x const over n
                pl.BlockSpec((dpad, tn), lambda i, n: (0, n)),   # w1 column tile
                pl.BlockSpec((1, tn), lambda i, n: (0, n)),      # b1 tile
                pl.BlockSpec((1, tn), lambda i, n: (0, n)),      # w2 tile
                pl.BlockSpec(memory_space=pltpu.MemorySpace.SMEM),
            ],
            out_specs=pl.BlockSpec((1, 1, tm), lambda i, n: (i, 0, 0)),
            scratch_shapes=[pltpu.VMEM((1, tm), jnp.float32)],
            compiler_params=pltpu.CompilerParams(
                dimension_semantics=("parallel", "arbitrary"),
                vmem_limit_bytes=vmem_limit,
            ),
            cost_estimate=cost,
        )(x2d, w1p, b1p, w2p, b2p)

    # strip padded rows (ragged last tile) and restore (n_batch, max_len, 1)
    return out3d.reshape(-1)[:m].reshape(n_batch, max_len, 1)


# ----------------------------- test harness ----------------------------------


def init_params(key, dim):
    """torch.nn.Linear-style init: U(-1/sqrt(fan_in), 1/sqrt(fan_in))."""
    k1, k2, k3, k4 = jax.random.split(key, 4)
    bound = 1.0 / jnp.sqrt(dim)
    w1 = jax.random.uniform(k1, (dim, dim), jnp.float32, -bound, bound)
    b1 = jax.random.uniform(k2, (dim,), jnp.float32, -bound, bound)
    w2 = jax.random.uniform(k3, (dim, 1), jnp.float32, -bound, bound)
    b2 = jax.random.uniform(k4, (1,), jnp.float32, -bound, bound)
    return w1, b1, w2, b2


def _reference(x, w1, b1, w2, b2):
    n_batch, max_len, dim = x.shape
    h = jnp.maximum(x.reshape(-1, dim) @ w1 + b1, 0.0)
    return (h @ w2 + b2).reshape(n_batch, max_len, 1)


if __name__ == "__main__":
    # ---- main test: small shapes consistent with the module ----
    key = jax.random.PRNGKey(0)
    n_batch, max_len, dim = 2, 8, 32
    kx, kp = jax.random.split(key)
    x = jax.random.normal(kx, (n_batch, max_len, dim), jnp.float32)
    w1, b1, w2, b2 = init_params(kp, dim)

    params = prepare_params(w1, b1, w2, b2)   # pad once, outside the hot path
    out = jax.block_until_ready(discriminator_forward(x, params))
    ref = _reference(x, w1, b1, w2, b2)
    assert out.shape == (n_batch, max_len, 1)
    assert jnp.allclose(out, ref, atol=1e-4, rtol=1e-4)

    # ---- larger shapes: >=2 parallel row tiles, ragged last tile, and the
    #      hidden-tiled (large-dim) path with cross-step accumulation ----
    kx2, kp2 = jax.random.split(jax.random.PRNGKey(1))
    x2 = jax.random.normal(kx2, (2, 200, 256), jnp.float32)
    p2 = init_params(kp2, 256)
    params2 = prepare_params(*p2)
    ref2 = _reference(x2, *p2)
    outA = jax.block_until_ready(discriminator_forward(x2, params2))
    outB = jax.block_until_ready(
        discriminator_forward(x2, params2, force_hidden_tiling=True, tn=128))
    assert jnp.allclose(outA, ref2, atol=1e-3, rtol=1e-3)
    assert jnp.allclose(outB, ref2, atol=1e-3, rtol=1e-3)

    # ---- small-dim path with >=3 row tiles (deeper x pipelining) ----
    kx3, kp3 = jax.random.split(jax.random.PRNGKey(2))
    x3 = jax.random.normal(kx3, (4, 128, 128), jnp.float32)
    p3 = init_params(kp3, 128)
    out3 = jax.block_until_ready(
        discriminator_forward(x3, prepare_params(*p3), tm=128))
    assert jnp.allclose(out3, _reference(x3, *p3), atol=1e-3, rtol=1e-3)

    print("KERNEL_OK")
</pallas_src>

<mosaic_0001>
module attributes {stable_mosaic.version = 11 : i64} {
  func.func @_disc_resident_kernel(%arg0: i32, %arg1: memref<16x128xf32, #tpu.memory_space<vmem>>, %arg2: memref<128x128xf32, #tpu.memory_space<vmem>>, %arg3: memref<1x128xf32, #tpu.memory_space<vmem>>, %arg4: memref<1x128xf32, #tpu.memory_space<vmem>>, %arg5: memref<1x1xf32, #tpu.memory_space<smem>>, %arg6: memref<1x1x16xf32, #tpu.memory_space<vmem>>) attributes {dimension_semantics = [#tpu.dimension_semantics<parallel>], iteration_bounds = array<i64: 1>, scalar_prefetch = 0 : i64, scratch_operands = 0 : i64, tpu.core_type = #tpu.core_type<tc>, window_params = [{transform_indices = @transform_0, window_bounds = array<i64: 16, 128>}, {pipeline_mode = #tpu.pipeline_mode<synchronous>, transform_indices = @transform_1, window_bounds = array<i64: 128, 128>}, {pipeline_mode = #tpu.pipeline_mode<synchronous>, transform_indices = @transform_2, window_bounds = array<i64: 1, 128>}, {pipeline_mode = #tpu.pipeline_mode<synchronous>, transform_indices = @transform_3, window_bounds = array<i64: 1, 128>}, {transform_indices = @transform_4, window_bounds = array<i64: 1, 1>}, {transform_indices = @transform_5, window_bounds = array<i64: 1, 1, 16>}]} {
    %c0 = arith.constant 0 : index
    %c0_0 = arith.constant 0 : index
    %0 = vector.load %arg1[%c0, %c0_0] : memref<16x128xf32, #tpu.memory_space<vmem>>, vector<16x128xf32>
    %c0_1 = arith.constant 0 : index
    %c0_2 = arith.constant 0 : index
    %1 = vector.load %arg2[%c0_1, %c0_2] : memref<128x128xf32, #tpu.memory_space<vmem>>, vector<128x128xf32>
    %cst = arith.constant dense<0.000000e+00> : vector<16x128xf32>
    %2 = tpu.matmul %0, %1, %cst {dimension_numbers = #tpu.dot_dimension_numbers<[1], [0], [0], [1], [0, 0, 1, 1], [], []>} : vector<16x128xf32>, vector<128x128xf32>, vector<16x128xf32> -> vector<16x128xf32>
    %c0_3 = arith.constant 0 : index
    %c0_4 = arith.constant 0 : index
    %3 = vector.load %arg3[%c0_3, %c0_4] : memref<1x128xf32, #tpu.memory_space<vmem>>, vector<1x128xf32>
    %4 = vector.broadcast %3 : vector<1x128xf32> to vector<16x128xf32>
    %5 = arith.addf %2, %4 : vector<16x128xf32>
    %cst_5 = arith.constant 0.000000e+00 : f32
    %6 = vector.broadcast %cst_5 : f32 to vector<16x128xf32>
    %7 = arith.maximumf %5, %6 : vector<16x128xf32>
    %c0_6 = arith.constant 0 : index
    %c0_7 = arith.constant 0 : index
    %8 = vector.load %arg4[%c0_6, %c0_7] : memref<1x128xf32, #tpu.memory_space<vmem>>, vector<1x128xf32>
    %9 = vector.broadcast %8 : vector<1x128xf32> to vector<16x128xf32>
    %10 = arith.mulf %7, %9 : vector<16x128xf32>
    %cst_8 = arith.constant dense<0.000000e+00> : vector<16xf32>
    %11 = vector.multi_reduction <add>, %10, %cst_8 [1] : vector<16x128xf32> to vector<16xf32>
    %c0_9 = arith.constant 0 : index
    %c0_10 = arith.constant 0 : index
    %12 = memref.load %arg5[%c0_9, %c0_10] : memref<1x1xf32, #tpu.memory_space<smem>>
    %13 = vector.broadcast %12 : f32 to vector<16xf32>
    %14 = arith.addf %11, %13 : vector<16xf32>
    %15 = vector.shape_cast %14 : vector<16xf32> to vector<1x1x16xf32>
    %c0_11 = arith.constant 0 : index
    %c0_12 = arith.constant 0 : index
    %c0_13 = arith.constant 0 : index
    %16 = vector.load %arg6[%c0_11, %c0_12, %c0_13] : memref<1x1x16xf32, #tpu.memory_space<vmem>>, vector<1x1x16xf32>
    tpu.vector_store %arg6[%c0_11, %c0_12, %c0_13], %15 {strides = array<i32>} : memref<1x1x16xf32, #tpu.memory_space<vmem>>, vector<1x1x16xf32>,
    return
  }
  func.func @transform_0(%arg0: i32) -> (i32, i32) {
    %c0_i32 = arith.constant 0 : i32
    %c0_i32_0 = arith.constant 0 : i32
    return %arg0, %c0_i32 : i32, i32
  }
  func.func @transform_1(%arg0: i32) -> (i32, i32) {
    %c0_i32 = arith.constant 0 : i32
    %c0_i32_0 = arith.constant 0 : i32
    %c0_i32_1 = arith.constant 0 : i32
    return %c0_i32, %c0_i32_0 : i32, i32
  }
  func.func @transform_2(%arg0: i32) -> (i32, i32) {
    %c0_i32 = arith.constant 0 : i32
    %c0_i32_0 = arith.constant 0 : i32
    %c0_i32_1 = arith.constant 0 : i32
    return %c0_i32, %c0_i32_0 : i32, i32
  }
  func.func @transform_3(%arg0: i32) -> (i32, i32) {
    %c0_i32 = arith.constant 0 : i32
    %c0_i32_0 = arith.constant 0 : i32
    %c0_i32_1 = arith.constant 0 : i32
    return %c0_i32, %c0_i32_0 : i32, i32
  }
  func.func @transform_4(%arg0: i32) -> (i32, i32) {
    %c0_i32 = arith.constant 0 : i32
    %c0_i32_0 = arith.constant 0 : i32
    %c0_i32_1 = arith.constant 0 : i32
    return %c0_i32, %c0_i32_0 : i32, i32
  }
  func.func @transform_5(%arg0: i32) -> (i32, i32, i32) {
    %c0_i32 = arith.constant 0 : i32
    %c0_i32_0 = arith.constant 0 : i32
    %c0_i32_1 = arith.constant 0 : i32
    return %arg0, %c0_i32, %c0_i32_0 : i32, i32, i32
  }
}

</mosaic_0001>

<bundles_post_ra>
// kernel: tpu_custom_call.1
= control target key start
LH: loop header
LB: loop body
LE: loop exit
PB: predicated region body
PF: predicated region fallthrough
CT: control target
= control target key end

     0   :  { %11 = vsyncpa [#allocation4], 0  ;;  %s447_s0 = inlined_call_operand.hbm [shape: f32[16,128], index: 0, kind: input, shape index: {}]   ;;  %s448_s1 = inlined_call_operand.hbm [shape: f32[128,128], index: 1, kind: input, shape index: {}]   ;;  %s449_s2 = inlined_call_operand.vmem [shape: f32[1,128], index: 2, kind: input, shape index: {}]   ;;  %s450_s3 = inlined_call_operand.vmem [shape: f32[1,128], index: 3, kind: input, shape index: {}]   ;;  %s451_s4 = inlined_call_operand.<no memory space> [shape: f32[1,1], index: 4, kind: input, shape index: {}]   ;;  %s452_s5 = inlined_call_operand.hbm [shape: f32[1,1,16], index: 5, kind: output, shape index: {}]  }
   0x1   :  { %12 = vsyncpa [#allocation7], 0 }
   0x2   :  { %13 = vsyncpa [#allocation5], 0  ;;  %s367_s18 = smov [#allocation3]   ;;  %s295_s22 = scalar_lea.hbm %s447_s0, 256 }
   0x3   :  { %s19_s19 = sshll.u32 %s367_s18, 4  ;;  %p296_p0 = scmp.ne.s32.totalorder %s447_s0, %s295_s22  ;;  %s20_s19 = int_to_ptr.vmem [resolvable:$true] %s19_s19 }
   0x4   :  { %p299_p1 = scmp.lt.u32.totalorder %s295_s22, %s447_s0 }
   0x6   :  { %p301_p2 = pnand %p299_p1, %p296_p0 }
   0x8   :  { %304 = shalt.err (!%p301_p2)
}
   0x9   :  { %s305_s27 = scalar_lea.vmem %s20_s19, 256  ;;  %p310_p4 = scmp.lt.s32.totalorder %s20_s19, %s20_s19 }
   0xa   :  { %p306_p3 = scmp.ne.s32.totalorder %s20_s19, %s305_s27  ;;  %p311_p5 = scmp.lt.s32.totalorder %s305_s27, %s305_s27 }
   0xc   :  { %p312_p6 = por %p311_p5, %p310_p4 }
   0xe   :  { %p313_p7 = pnand %p312_p6, %p306_p3 }
  0x10   :  { %316 = shalt.err (!%p313_p7)
}
  0x11   :  { %s368_s28 = smov 128   ;;  %s369_s29 = smov 8  }
  0x12   :  { %25 = dma.hbm_to_vmem [thread:$0]  %s447_s0, 256, %s20_s19, [#allocation4], %s368_s28, %s368_s28, %s369_s29  }
  0x13   :  { %s370_s7 = smov [#allocation6]   ;;  %s317_s11 = scalar_lea.hbm %s448_s1, 2048 }
  0x14   :  { %s31_s8 = sshll.u32 %s370_s7, 4  ;;  %p318_p8 = scmp.ne.s32.totalorder %s448_s1, %s317_s11  ;;  %s32_s8 = int_to_ptr.vmem [resolvable:$true] %s31_s8 }
  0x15   :  { %p321_p9 = scmp.lt.u32.totalorder %s317_s11, %s448_s1 }
  0x17   :  { %p323_p10 = pnand %p321_p9, %p318_p8 }
  0x19   :  { %326 = shalt.err (!%p323_p10)
}
  0x1a   :  { %s327_s16 = scalar_lea.vmem %s32_s8, 2048  ;;  %p332_p12 = scmp.lt.s32.totalorder %s32_s8, %s32_s8 }
  0x1b   :  { %p328_p11 = scmp.ne.s32.totalorder %s32_s8, %s327_s16  ;;  %p333_p13 = scmp.lt.s32.totalorder %s327_s16, %s327_s16 }
  0x1d   :  { %p334_p0 = por %p333_p13, %p332_p12 }
  0x1f   :  { %p335_p1 = pnand %p334_p0, %p328_p11 }
  0x21   :  { %338 = shalt.err (!%p335_p1)
}
  0x22   :  { %37 = dma.hbm_to_vmem [thread:$0]  %s448_s1, 2048, %s32_s8, [#allocation7], %s368_s28, %s368_s28, %s369_s29  }
  0x23   :  { %361 = dma.done.wait [#allocation4], 256  }
  0x24   :  { %362 = vsyncadd [#allocation4], 4294967040 }
  0x25   :  { %363 = dma.done.wait [#allocation7], 2048  }
  0x26   :  { %364 = vsyncadd [#allocation7], 4294965248  ;;  %v52_v0 = vld [vmem:[#allocation6] sm:$0xff]  ;;  %v53_v1 = vld [vmem:[#allocation6 + $0x8] sm:$0xff]  ;;  %v171_v36 = vlaneseq  ;;  %v166_v40 = vstv %s451_s4  ;;  %vm182_vm0 = vcmask 130112   ;;  %vm185_vm1 = vcmask 122880  }
  0x27   :  { %v54_v2 = vld [vmem:[#allocation6 + $0x10] sm:$0xff]  ;;  %v258_v3 = vpack.c.bf16 %v53_v1, %v52_v0  ;;  %v55_v4 = vld [vmem:[#allocation6 + $0x18] sm:$0xff]  ;;  %v56_v6 = vld [vmem:[#allocation6 + $0x20] sm:$0xff] }
  0x28   :  { %v262_v5 = vpack.c.bf16 %v55_v4, %v54_v2  ;;  %v57_v7 = vld [vmem:[#allocation6 + $0x28] sm:$0xff]  ;;  %v50_v9 = vld [vmem:[#allocation3] sm:$0xff]  ;;  %v59_v11 = vld [vmem:[#allocation6 + $0x38] sm:$0xff]  ;;  %v172_v37 = vand.u32 127, %v171_v36  ;;  %v174_v38 = vshrl.u32 %v171_v36, 7 }
  0x29   :  { %259 = vmatprep.subr.bf16.mxu0 %v258_v3  ;;  %v266_v8 = vpack.c.bf16 %v57_v7, %v56_v6  ;;  %v58_v10 = vld [vmem:[#allocation6 + $0x30] sm:$0xff]  ;;  %255 = vmatprep.mubr.f32.mxu0 %v50_v9  ;;  %v60_v13 = vld [vmem:[#allocation6 + $0x40] sm:$0xff]  ;;  %v61_v14 = vld [vmem:[#allocation6 + $0x48] sm:$0xff] }
  0x2a   :  { %261 = vmatpush3.bf16.msra.mxu0 %v258_v3  ;;  %v270_v12 = vpack.c.bf16 %v59_v11, %v58_v10  ;;  %v274_v15 = vpack.c.bf16 %v61_v14, %v60_v13  ;;  %v62_v16 = vld [vmem:[#allocation6 + $0x50] sm:$0xff]  ;;  %v63_v17 = vld [vmem:[#allocation6 + $0x58] sm:$0xff]  ;;  %v64_v19 = vld [vmem:[#allocation6 + $0x60] sm:$0xff]  ;;  %v177_v39 = vadd.s32 4294967288, %v172_v37  ;;  %v175_v42 = vsub.s32 %v172_v37, %v174_v38 }
  0x2b   :  { %263 = vmatprep.subr.bf16.mxu0 %v262_v5  ;;  %v278_v18 = vpack.c.bf16 %v63_v17, %v62_v16  ;;  %v65_v20 = vld [vmem:[#allocation6 + $0x68] sm:$0xff]  ;;  %v66_v22 = vld [vmem:[#allocation6 + $0x70] sm:$0xff]  ;;  %v67_v23 = vld [vmem:[#allocation6 + $0x78] sm:$0xff] }
  0x2c   :  { %v282_v21 = vpack.c.bf16 %v65_v20, %v64_v19  ;;  %v286_v24 = vpack.c.bf16 %v67_v23, %v66_v22  ;;  %v51_v25 = vld [vmem:[#allocation3 + $0x8] sm:$0xff]  ;;  %v203_v26 = vld [vmem:[%s449_s2] ss:$0 sm:$0xff]  ;;  %v180_v44 = vsub.s32 %v177_v39, %v174_v38 }
  0x2d   :  { %v204_v31 = vld [vmem:[%s450_s3] ss:$0 sm:$0xff]  ;;  %s371_s3 = smov [#allocation8]  }
  0x2e   :  { %265 = vmatpush3.bf16.msra.mxu0 %v262_v5  ;;  %s193_s22 = sshll.u32 %s371_s3, 4  ;;  %s194_s22 = int_to_ptr.vmem [resolvable:$true] %s193_s22 }
  0x2f   :  { %267 = vmatprep.subr.bf16.mxu0 %v266_v8  ;;  %s339_s23 = scalar_lea.vmem %s194_s22, 16  ;;  %s343_s24 = scalar_lea.vmem %s194_s22, 32 }
  0x30   :  { %p340_p2 = scmp.ne.s32.totalorder %s194_s22, %s339_s23  ;;  %p344_p3 = scmp.lt.s32.totalorder %s194_s22, %s194_s22 }
  0x31   :  { %p345_p4 = scmp.lt.s32.totalorder %s343_s24, %s339_s23 }
  0x32   :  { %269 = vmatpush3.bf16.msra.mxu0 %v266_v8 }
  0x33   :  { %271 = vmatprep.subr.bf16.mxu0 %v270_v12  ;;  %p346_p5 = por %p345_p4, %p344_p3 }
  0x35   :  { %p347_p6 = pnand %p346_p5, %p340_p2 }
  0x36   :  { %273 = vmatpush3.bf16.msra.mxu0 %v270_v12 }
  0x37   :  { %275 = vmatprep.subr.bf16.mxu0 %v274_v15 }
  0x3a   :  { %277 = vmatpush3.bf16.msra.mxu0 %v274_v15 }
  0x3b   :  { %279 = vmatprep.subr.bf16.mxu0 %v278_v18 }
  0x3e   :  { %281 = vmatpush3.bf16.msra.mxu0 %v278_v18 }
  0x3f   :  { %283 = vmatprep.subr.bf16.mxu0 %v282_v21 }
  0x42   :  { %285 = vmatpush3.bf16.msra.mxu0 %v282_v21 }
  0x43   :  { %287 = vmatprep.subr.bf16.mxu0 %v286_v24 }
  0x46   :  { %289 = vmatpush3.bf16.msra.mxu0 %v286_v24 }
  0x49   :  { %256 = vmatmul.mubr.f32.vlgmr.msra.gmra.mrb[0].mxu0 %v51_v25 }
 0x11c   :  { %v257_v27 = vpop.f32.mrb[0].mxu0 }
 0x11d   :  { %v141_v28 = vpop.f32.mrb[1].mxu0  ;;  %v147_v29 = vadd.f32 %v257_v27, %v203_v26 }
 0x11e   :  { %v142_v30 = vadd.f32 %v203_v26, %v141_v28 }
 0x11f   :  { %v151_v33 = vmax.f32 %v147_v29, 0.0 }
 0x120   :  { %v150_v32 = vmax.f32 %v142_v30, 0.0 }
 0x121   :  { %v160_v35 = vmul.f32 %v204_v31, %v151_v33 }
 0x122   :  { %v159_v34 = vmul.f32 %v204_v31, %v150_v32 }
 0x124   :  { %161 = vadd.xlane.f32.xlu0 %v159_v34 }
 0x128   :  { %163 = vadd.xlane.f32.xlu0 %v160_v35 }
 0x1b1   :  { %v162_v41 = vpop.xlane.xlu0 %161 }
 0x1b2   :  { %v167_v43 = vadd.f32 %v166_v40, %v162_v41 }
 0x1b4   :  { %v176_v47 = vrot.slane %v167_v43, %v175_v42 }
 0x1b5   :  { %v164_v45 = vpop.xlane.xlu0 %163 }
 0x1b6   :  { %v168_v46 = vadd.f32 %v166_v40, %v164_v45 }
 0x1b8   :  { %v181_v48 = vrot.slane %v168_v46, %v180_v44 }
 0x1ba   :  { %v183_v49 = vsel %vm182_vm0, %v181_v48, %v176_v47 }
 0x1bb   :  { %186 = vst.msk [vmem:[#allocation8] sm:$0x1] %vm185_vm1, %v183_v49 }
 0x1bc   :  { %350 = shalt.err (!%p347_p6)
}
 0x1bd   :  { %s351_s26 = scalar_lea.hbm %s452_s5, 16 }
 0x1be   :  { %p352_p7 = scmp.ne.s32.totalorder %s452_s5, %s351_s26  ;;  %p355_p8 = scmp.lt.u32.totalorder %s351_s26, %s452_s5 }
 0x1c0   :  { %p357_p9 = pnand %p355_p8, %p352_p7 }
 0x1c2   :  { %360 = shalt.err (!%p357_p9)
}
 0x1c3   :  { %196 = dma.vmem_to_hbm [thread:$0]  %s194_s22, 16, %s452_s5, [#allocation5]  }
 0x1c4   :  { %365 = dma.done.wait [#allocation5], 16  }
 0x1c5   :  { %366 = vsyncadd [#allocation5], 4294967280 }
 0x1c6   :  { %200 = vsyncpa [#allocation4], 1 }
 0x1c7   :  { %201 = vsyncpa [#allocation7], 1 }
 0x1c8   :  { %202 = vsyncpa [#allocation5], 1 }

</bundles_post_ra>
